<compile_context>
chip_gen: v7x
topology: tpu7x:2x2x1
jax: 0.10.0
libtpu: 0.0.40
codegen_flags: <defaults>
</compile_context>

<pallas_src>
import functools

import jax
import jax.numpy as jnp
from jax.experimental import pallas as pl
from jax.experimental.pallas import tpu as pltpu

_LN_EPS = 1e-5
_MASK_VALUE = -1e30
_ROW_TILE = 256  # row tile for the fused LN / linear / FFN kernels


def _pick_row_tile(n):
    return n if n <= _ROW_TILE else _ROW_TILE


def _parallel(n_axes=1):
    return pltpu.CompilerParams(dimension_semantics=("parallel",) * n_axes)


# ----------------------------- Pallas kernels -----------------------------

def _ln_f32(x_ref, g_ref, b_ref):
    """LayerNorm over the last dim, math in f32."""
    xf = x_ref[...].astype(jnp.float32)
    mu = jnp.mean(xf, axis=-1, keepdims=True)
    var = jnp.mean(jnp.square(xf - mu), axis=-1, keepdims=True)
    y = (xf - mu) * jax.lax.rsqrt(var + _LN_EPS)
    return xf, y * g_ref[...].astype(jnp.float32) + b_ref[...].astype(jnp.float32)


def _linear_kernel(*refs, activation, has_res):
    """y = x @ W + b  [relu]  [+ residual]   — native-dtype MXU, f32 accum."""
    idx = 0
    x_ref = refs[idx]; idx += 1
    w_ref = refs[idx]; idx += 1
    b_ref = refs[idx]; idx += 1
    res_ref = None
    if has_res:
        res_ref = refs[idx]; idx += 1
    o_ref = refs[idx]

    y = jnp.dot(x_ref[...], w_ref[...], preferred_element_type=jnp.float32)
    y = y + b_ref[...].astype(jnp.float32)
    if activation == "relu":
        y = jnp.maximum(y, 0.0)
    if has_res:
        y = y + res_ref[...].astype(jnp.float32)
    o_ref[...] = y.astype(o_ref.dtype)


def _ln_linear_kernel(x_ref, g_ref, b_ref, w_ref, bias_ref, o_ref):
    """y = LayerNorm(x) @ W + bias."""
    _, y = _ln_f32(x_ref, g_ref, b_ref)
    out = jnp.dot(y.astype(w_ref.dtype), w_ref[...],
                  preferred_element_type=jnp.float32)
    out = out + bias_ref[...].astype(jnp.float32)
    o_ref[...] = out.astype(o_ref.dtype)


def _ln_qkv_kernel(x_ref, g_ref, b_ref, w_ref, bias_ref, q_ref, k_ref, v_ref):
    """q,k,v = split(LayerNorm(x) @ W_in + b_in)  — fused self-attn in-projection."""
    _, y = _ln_f32(x_ref, g_ref, b_ref)
    out = jnp.dot(y.astype(w_ref.dtype), w_ref[...],
                  preferred_element_type=jnp.float32)
    out = out + bias_ref[...].astype(jnp.float32)
    d = q_ref.shape[-1]
    q_ref[...] = out[:, 0 * d:1 * d].astype(q_ref.dtype)
    k_ref[...] = out[:, 1 * d:2 * d].astype(k_ref.dtype)
    v_ref[...] = out[:, 2 * d:3 * d].astype(v_ref.dtype)


def _mem_kv_kernel(mem_ref, pos_ref, wk_ref, bk_ref, wv_ref, bv_ref, k_ref, v_ref):
    """k = (mem + pos) @ Wk + bk;  v = mem @ Wv + bv  — memory read from HBM once."""
    mem = mem_ref[...]
    kin = mem + pos_ref[...]
    k = jnp.dot(kin, wk_ref[...], preferred_element_type=jnp.float32)
    k = k + bk_ref[...].astype(jnp.float32)
    v = jnp.dot(mem, wv_ref[...], preferred_element_type=jnp.float32)
    v = v + bv_ref[...].astype(jnp.float32)
    k_ref[...] = k.astype(k_ref.dtype)
    v_ref[...] = v.astype(v_ref.dtype)


def _ln_ffn_kernel(x_ref, g_ref, b_ref, w1_ref, b1_ref, w2_ref, b2_ref, o_ref):
    """out = x + FF2(relu(FF1(LayerNorm(x))))  — fused pre-norm FFN block."""
    xf, y = _ln_f32(x_ref, g_ref, b_ref)
    h = jnp.dot(y.astype(w1_ref.dtype), w1_ref[...],
                preferred_element_type=jnp.float32)
    h = jnp.maximum(h + b1_ref[...].astype(jnp.float32), 0.0)
    f = jnp.dot(h.astype(w2_ref.dtype), w2_ref[...],
                preferred_element_type=jnp.float32)
    f = f + b2_ref[...].astype(jnp.float32)
    o_ref[...] = (xf + f).astype(o_ref.dtype)


def _layernorm_kernel(x_ref, g_ref, b_ref, o_ref):
    _, y = _ln_f32(x_ref, g_ref, b_ref)
    o_ref[...] = y.astype(o_ref.dtype)


def _mha_kernel(*refs, nheads, scale, has_mask, has_kpad):
    """One batch element, all heads: q (1,Tq,D), k/v (1,Tk,D) with D = H*dh.

    Bias is built in-kernel from the 2-D attn mask and/or per-batch key-pad bias; the
    head-merged (Tq, D) output tile is stored in a single lane-dense write."""
    idx = 0
    q_ref = refs[idx]; idx += 1
    k_ref = refs[idx]; idx += 1
    v_ref = refs[idx]; idx += 1
    mask_ref = None
    if has_mask:
        mask_ref = refs[idx]; idx += 1
    kpad_ref = None
    if has_kpad:
        kpad_ref = refs[idx]; idx += 1
    o_ref = refs[idx]

    q = q_ref[0]          # (Tq, D) native dtype
    k = k_ref[0]          # (Tk, D)
    v = v_ref[0]          # (Tk, D)
    D = q.shape[-1]
    dh = D // nheads

    bias = None
    if has_mask:
        bias = mask_ref[...].astype(jnp.float32)          # (Tq, Tk)
    if has_kpad:
        kp = kpad_ref[0].astype(jnp.float32)              # (1, Tk)
        bias = kp if bias is None else bias + kp

    outs = []
    for h in range(nheads):                                # small static unroll over heads
        qh = q[:, h * dh:(h + 1) * dh]
        kh = k[:, h * dh:(h + 1) * dh]
        vh = v[:, h * dh:(h + 1) * dh]
        s = jax.lax.dot_general(qh, kh, (((1,), (1,)), ((), ())),
                                preferred_element_type=jnp.float32) * scale
        if bias is not None:
            s = s + bias
        m = jnp.max(s, axis=-1, keepdims=True)
        p = jnp.exp(s - m)
        denom = jnp.sum(p, axis=-1, keepdims=True)
        p = p * pl.reciprocal(denom, approx=True)          # divide on the EUP slot
        outs.append(jnp.dot(p.astype(vh.dtype), vh,
                            preferred_element_type=jnp.float32))
    o_ref[0] = jnp.concatenate(outs, axis=-1).astype(o_ref.dtype)


# ----------------------------- wrappers (pallas_call plumbing) -----------------------------

def linear(x, w, b, *, residual=None, activation=None):
    """y = x @ W + b [relu] [+ residual]; W is (Din, Dout)."""
    shape = x.shape
    din, dout = w.shape
    x2 = x.reshape(-1, din)
    n = x2.shape[0]
    tm = _pick_row_tile(n)

    args = [x2, w, b.reshape(1, dout)]
    in_specs = [pl.BlockSpec((tm, din), lambda i: (i, 0)),
                pl.BlockSpec((din, dout), lambda i: (0, 0)),
                pl.BlockSpec((1, dout), lambda i: (0, 0))]
    if residual is not None:
        args.append(residual.reshape(-1, dout))
        in_specs.append(pl.BlockSpec((tm, dout), lambda i: (i, 0)))

    out = pl.pallas_call(
        functools.partial(_linear_kernel, activation=activation,
                          has_res=residual is not None),
        out_shape=jax.ShapeDtypeStruct((n, dout), x.dtype),
        grid=(pl.cdiv(n, tm),),
        in_specs=in_specs,
        out_specs=pl.BlockSpec((tm, dout), lambda i: (i, 0)),
        compiler_params=_parallel(),
    )(*args)
    return out.reshape(shape[:-1] + (dout,))


def ln_linear(x, g, b, w, bias):
    """y = LayerNorm(x; g, b) @ W + bias   (fused pre-norm projection)."""
    shape = x.shape
    din, dout = w.shape
    x2 = x.reshape(-1, din)
    n = x2.shape[0]
    tm = _pick_row_tile(n)
    out = pl.pallas_call(
        _ln_linear_kernel,
        out_shape=jax.ShapeDtypeStruct((n, dout), x.dtype),
        grid=(pl.cdiv(n, tm),),
        in_specs=[
            pl.BlockSpec((tm, din), lambda i: (i, 0)),
            pl.BlockSpec((1, din), lambda i: (0, 0)),
            pl.BlockSpec((1, din), lambda i: (0, 0)),
            pl.BlockSpec((din, dout), lambda i: (0, 0)),
            pl.BlockSpec((1, dout), lambda i: (0, 0)),
        ],
        out_specs=pl.BlockSpec((tm, dout), lambda i: (i, 0)),
        compiler_params=_parallel(),
    )(x2, g.reshape(1, din), b.reshape(1, din), w, bias.reshape(1, dout))
    return out.reshape(shape[:-1] + (dout,))


def ln_qkv(x, g, b, w, bias):
    """(q,k,v) = split(LayerNorm(x) @ W + bias, 3); W is (D, 3D). Returns three (...,D)."""
    shape = x.shape
    d = shape[-1]
    x2 = x.reshape(-1, d)
    n = x2.shape[0]
    tm = _pick_row_tile(n)
    row_spec = pl.BlockSpec((tm, d), lambda i: (i, 0))
    q, k, v = pl.pallas_call(
        _ln_qkv_kernel,
        out_shape=(jax.ShapeDtypeStruct((n, d), x.dtype),) * 3,
        grid=(pl.cdiv(n, tm),),
        in_specs=[
            pl.BlockSpec((tm, d), lambda i: (i, 0)),
            pl.BlockSpec((1, d), lambda i: (0, 0)),
            pl.BlockSpec((1, d), lambda i: (0, 0)),
            pl.BlockSpec((d, 3 * d), lambda i: (0, 0)),
            pl.BlockSpec((1, 3 * d), lambda i: (0, 0)),
        ],
        out_specs=[row_spec, row_spec, row_spec],
        compiler_params=_parallel(),
    )(x2, g.reshape(1, d), b.reshape(1, d), w, bias.reshape(1, 3 * d))
    out_shape = shape[:-1] + (d,)
    return q.reshape(out_shape), k.reshape(out_shape), v.reshape(out_shape)


def mem_kv_proj(memory, pos, wk, bk, wv, bv):
    """k = (memory + pos) @ Wk + bk ; v = memory @ Wv + bv  (shared memory load)."""
    shape = memory.shape
    d = shape[-1]
    m2 = memory.reshape(-1, d)
    p2 = pos.reshape(-1, d)
    n = m2.shape[0]
    tm = _pick_row_tile(n)
    row_spec = pl.BlockSpec((tm, d), lambda i: (i, 0))
    par_spec = pl.BlockSpec((d, d), lambda i: (0, 0))
    b_spec = pl.BlockSpec((1, d), lambda i: (0, 0))
    k, v = pl.pallas_call(
        _mem_kv_kernel,
        out_shape=(jax.ShapeDtypeStruct((n, d), memory.dtype),) * 2,
        grid=(pl.cdiv(n, tm),),
        in_specs=[row_spec, row_spec, par_spec, b_spec, par_spec, b_spec],
        out_specs=[row_spec, row_spec],
        compiler_params=_parallel(),
    )(m2, p2, wk, bk.reshape(1, d), wv, bv.reshape(1, d))
    return k.reshape(shape), v.reshape(shape)


def ln_ffn_residual(x, g, b, w1, b1, w2, b2):
    """out = x + FF2(relu(FF1(LayerNorm(x))))   (fully fused FFN block)."""
    shape = x.shape
    d = shape[-1]
    dff = w1.shape[1]
    x2 = x.reshape(-1, d)
    n = x2.shape[0]
    tm = _pick_row_tile(n)
    out = pl.pallas_call(
        _ln_ffn_kernel,
        out_shape=jax.ShapeDtypeStruct((n, d), x.dtype),
        grid=(pl.cdiv(n, tm),),
        in_specs=[
            pl.BlockSpec((tm, d), lambda i: (i, 0)),
            pl.BlockSpec((1, d), lambda i: (0, 0)),
            pl.BlockSpec((1, d), lambda i: (0, 0)),
            pl.BlockSpec((d, dff), lambda i: (0, 0)),
            pl.BlockSpec((1, dff), lambda i: (0, 0)),
            pl.BlockSpec((dff, d), lambda i: (0, 0)),
            pl.BlockSpec((1, d), lambda i: (0, 0)),
        ],
        out_specs=pl.BlockSpec((tm, d), lambda i: (i, 0)),
        compiler_params=_parallel(),
    )(x2, g.reshape(1, d), b.reshape(1, d), w1, b1.reshape(1, dff), w2, b2.reshape(1, d))
    return out.reshape(shape)


def layer_norm(x, g, b):
    shape = x.shape
    d = shape[-1]
    x2 = x.reshape(-1, d)
    n = x2.shape[0]
    tm = _pick_row_tile(n)
    out = pl.pallas_call(
        _layernorm_kernel,
        out_shape=jax.ShapeDtypeStruct((n, d), x.dtype),
        grid=(pl.cdiv(n, tm),),
        in_specs=[
            pl.BlockSpec((tm, d), lambda i: (i, 0)),
            pl.BlockSpec((1, d), lambda i: (0, 0)),
            pl.BlockSpec((1, d), lambda i: (0, 0)),
        ],
        out_specs=pl.BlockSpec((tm, d), lambda i: (i, 0)),
        compiler_params=_parallel(),
    )(x2, g.reshape(1, d), b.reshape(1, d))
    return out.reshape(shape)


def mha_merged(qb, kb, vb, *, nheads, attn_mask=None, key_pad_bias=None):
    """qb: (B,Tq,D), kb/vb: (B,Tk,D) head-merged. attn_mask: (Tq,Tk) additive,
    key_pad_bias: (B,Tk) additive (-1e30 at padded keys). -> (B,Tq,D)."""
    B, Tq, D = qb.shape
    Tk = kb.shape[1]
    dh = D // nheads
    scale = 1.0 / float(dh) ** 0.5

    args = [qb, kb, vb]
    in_specs = [
        pl.BlockSpec((1, Tq, D), lambda i: (i, 0, 0)),
        pl.BlockSpec((1, Tk, D), lambda i: (i, 0, 0)),
        pl.BlockSpec((1, Tk, D), lambda i: (i, 0, 0)),
    ]
    if attn_mask is not None:
        args.append(attn_mask.astype(jnp.float32))
        in_specs.append(pl.BlockSpec((Tq, Tk), lambda i: (0, 0)))
    if key_pad_bias is not None:
        args.append(key_pad_bias.astype(jnp.float32).reshape(B, 1, Tk))
        in_specs.append(pl.BlockSpec((1, 1, Tk), lambda i: (i, 0, 0)))

    out = pl.pallas_call(
        functools.partial(_mha_kernel, nheads=nheads, scale=scale,
                          has_mask=attn_mask is not None,
                          has_kpad=key_pad_bias is not None),
        out_shape=jax.ShapeDtypeStruct((B, Tq, D), qb.dtype),
        grid=(B,),
        in_specs=in_specs,
        out_specs=pl.BlockSpec((1, Tq, D), lambda i: (i, 0, 0)),
        compiler_params=_parallel(),
    )(*args)
    return out


# ----------------------------- glue (layer, decoder) -----------------------------

def decoder_layer(tgt_bt, memory_bt, pos_bt, key_pad_bias, attn_mask, pre_kv, p, H):
    """tgt_bt: (B, T, D) batch-first activations; returns (new tgt_bt, kv cache)."""
    B, T, D = tgt_bt.shape
    dh = D // H

    # --- self-attention block (pre-norm): LN1 + QKV projection fused, q/k/v split in-kernel ---
    q, k, v = ln_qkv(tgt_bt, p["norm1_w"], p["norm1_b"], p["sa_in_w"], p["sa_in_b"])  # (B,T,D) x3
    kh = k.reshape(B, T, H, dh).transpose(0, 2, 1, 3)                                 # (B,H,T,dh)
    vh = v.reshape(B, T, H, dh).transpose(0, 2, 1, 3)
    if pre_kv is not None:
        # TODO(synk): replace O(T) concat with aliased in-place cache writes
        # (input_output_aliases + pl.ds on a preallocated (2,B,H,T_max,dh) cache).
        kh = jnp.concatenate([pre_kv[0], kh], axis=2)
        vh = jnp.concatenate([pre_kv[1], vh], axis=2)
        Tk = kh.shape[2]
        k_att = kh.transpose(0, 2, 1, 3).reshape(B, Tk, D)
        v_att = vh.transpose(0, 2, 1, 3).reshape(B, Tk, D)
    else:
        k_att, v_att = k, v                                                            # already head-merged
    cur_kv = jnp.stack([kh, vh], axis=0)                                               # (2,B,H,Tk,dh)

    sa = mha_merged(q, k_att, v_att, nheads=H, attn_mask=attn_mask)                    # (B,T,D)
    tgt_bt = linear(sa, p["sa_out_w"], p["sa_out_b"], residual=tgt_bt)

    # --- cross-attention block (pre-norm): LN2 + Q projection fused; K/V of memory fused ---
    # TODO(synk): memory K/V projections are constant across decode steps and could be cached
    # per layer; recomputed here to preserve the original module's stateless forward signature.
    qc = ln_linear(tgt_bt, p["norm2_w"], p["norm2_b"], p["ca_q_w"], p["ca_q_b"])       # (B,T,D)
    kc, vc = mem_kv_proj(memory_bt, pos_bt, p["ca_k_w"], p["ca_k_b"],
                         p["ca_v_w"], p["ca_v_b"])                                     # (B,S,D) x2
    ca = mha_merged(qc, kc, vc, nheads=H, key_pad_bias=key_pad_bias)                   # (B,T,D)
    tgt_bt = linear(ca, p["ca_out_w"], p["ca_out_b"], residual=tgt_bt)

    # --- FFN block: LN3 + FF1(ReLU) + FF2 + residual fully fused ---
    tgt_bt = ln_ffn_residual(tgt_bt, p["norm3_w"], p["norm3_b"],
                             p["ff1_w"], p["ff1_b"], p["ff2_w"], p["ff2_b"])
    return tgt_bt, cur_kv


def transformer_decoder(tgt, memory, memory_key_padding_mask, pos, params,
                        pre_kv_list=None, self_attn_mask=None, nhead=4):
    """tgt: (T,B,D), memory/pos: (S,B,D), mask: (B,S) bool.  Returns ((T,B,D), kv list)."""
    num_layers = len(params["layers"])
    if pre_kv_list is None:
        pre_kv_list = [None] * num_layers

    # one-time layout change to batch-first; all kernels operate on (B, T, D) rows
    tgt_bt = tgt.transpose(1, 0, 2)
    memory_bt = memory.transpose(1, 0, 2)
    pos_bt = pos.transpose(1, 0, 2)
    key_pad_bias = jnp.where(memory_key_padding_mask, _MASK_VALUE, 0.0).astype(jnp.float32)

    output = tgt_bt
    cur_kv_list = []
    for lp, pre_kv in zip(params["layers"], pre_kv_list):
        output, cur_kv = decoder_layer(output, memory_bt, pos_bt, key_pad_bias,
                                       self_attn_mask, pre_kv, lp, nhead)
        cur_kv_list.append(cur_kv)
    output = layer_norm(output, params["norm_w"], params["norm_b"])   # decoder-level norm
    return output.transpose(1, 0, 2), cur_kv_list


def init_params(key, d_model, dim_ff, num_layers, dtype=jnp.float32):
    def w(k, shape, scale=0.02):
        return (scale * jax.random.normal(k, shape)).astype(dtype)

    layers = []
    for _ in range(num_layers):
        key, *ks = jax.random.split(key, 9)
        layers.append({
            "sa_in_w": w(ks[0], (d_model, 3 * d_model)), "sa_in_b": jnp.zeros((3 * d_model,), dtype),
            "sa_out_w": w(ks[1], (d_model, d_model)),    "sa_out_b": jnp.zeros((d_model,), dtype),
            "ca_q_w": w(ks[2], (d_model, d_model)),      "ca_q_b": jnp.zeros((d_model,), dtype),
            "ca_k_w": w(ks[3], (d_model, d_model)),      "ca_k_b": jnp.zeros((d_model,), dtype),
            "ca_v_w": w(ks[4], (d_model, d_model)),      "ca_v_b": jnp.zeros((d_model,), dtype),
            "ca_out_w": w(ks[5], (d_model, d_model)),    "ca_out_b": jnp.zeros((d_model,), dtype),
            "ff1_w": w(ks[6], (d_model, dim_ff)),        "ff1_b": jnp.zeros((dim_ff,), dtype),
            "ff2_w": w(ks[7], (dim_ff, d_model)),        "ff2_b": jnp.zeros((d_model,), dtype),
            "norm1_w": jnp.ones((d_model,), dtype), "norm1_b": jnp.zeros((d_model,), dtype),
            "norm2_w": jnp.ones((d_model,), dtype), "norm2_b": jnp.zeros((d_model,), dtype),
            "norm3_w": jnp.ones((d_model,), dtype), "norm3_b": jnp.zeros((d_model,), dtype),
        })
    return {"layers": layers,
            "norm_w": jnp.ones((d_model,), dtype),
            "norm_b": jnp.zeros((d_model,), dtype)}


if __name__ == "__main__":
    B, T, S, D, H, FF, L = 2, 8, 16, 32, 4, 64, 2
    key = jax.random.PRNGKey(0)
    kp, kt, km, kpos = jax.random.split(key, 4)

    params = init_params(kp, D, FF, L)
    tgt = jax.random.normal(kt, (T, B, D), jnp.float32)        # (seq, batch, d_model)
    memory = jax.random.normal(km, (S, B, D), jnp.float32)     # encoder memory
    pos = jax.random.normal(kpos, (S, B, D), jnp.float32)      # positional embedding of memory
    memory_key_padding_mask = jnp.zeros((B, S), bool).at[1, S - 3:].set(True)
    causal = jnp.where(jnp.tril(jnp.ones((T, T), bool)), 0.0, _MASK_VALUE).astype(jnp.float32)

    # full-sequence pass (pre_kv = None for every layer)
    out, kv_list = transformer_decoder(tgt, memory, memory_key_padding_mask, pos, params,
                                       pre_kv_list=[None] * L, self_attn_mask=causal, nhead=H)
    jax.block_until_ready(out)

    # one incremental decoding step reusing the returned kv cache
    tgt_step = jax.random.normal(jax.random.PRNGKey(1), (1, B, D), jnp.float32)
    out2, kv_list2 = transformer_decoder(tgt_step, memory, memory_key_padding_mask, pos, params,
                                         pre_kv_list=kv_list, self_attn_mask=None, nhead=H)
    jax.block_until_ready(out2)

    assert out.shape == (T, B, D)
    assert out2.shape == (1, B, D)
    assert kv_list[0].shape == (2, B, H, T, D // H)
    assert kv_list2[0].shape == (2, B, H, T + 1, D // H)
    assert bool(jnp.all(jnp.isfinite(out))) and bool(jnp.all(jnp.isfinite(out2)))
    print("KERNEL_OK")
</pallas_src>

<mosaic_0001>
module attributes {stable_mosaic.version = 11 : i64} {
  func.func @_ln_qkv_kernel(%arg0: i32, %arg1: memref<16x32xf32, #tpu.memory_space<vmem>>, %arg2: memref<1x32xf32, #tpu.memory_space<vmem>>, %arg3: memref<1x32xf32, #tpu.memory_space<vmem>>, %arg4: memref<32x96xf32, #tpu.memory_space<vmem>>, %arg5: memref<1x96xf32, #tpu.memory_space<vmem>>, %arg6: memref<16x32xf32, #tpu.memory_space<vmem>>, %arg7: memref<16x32xf32, #tpu.memory_space<vmem>>, %arg8: memref<16x32xf32, #tpu.memory_space<vmem>>) attributes {dimension_semantics = [#tpu.dimension_semantics<parallel>], iteration_bounds = array<i64: 1>, scalar_prefetch = 0 : i64, scratch_operands = 0 : i64, tpu.core_type = #tpu.core_type<tc>, window_params = [{transform_indices = @transform_0, window_bounds = array<i64: 16, 32>}, {pipeline_mode = #tpu.pipeline_mode<synchronous>, transform_indices = @transform_1, window_bounds = array<i64: 1, 32>}, {pipeline_mode = #tpu.pipeline_mode<synchronous>, transform_indices = @transform_2, window_bounds = array<i64: 1, 32>}, {pipeline_mode = #tpu.pipeline_mode<synchronous>, transform_indices = @transform_3, window_bounds = array<i64: 32, 96>}, {pipeline_mode = #tpu.pipeline_mode<synchronous>, transform_indices = @transform_4, window_bounds = array<i64: 1, 96>}, {transform_indices = @transform_5, window_bounds = array<i64: 16, 32>}, {transform_indices = @transform_6, window_bounds = array<i64: 16, 32>}, {transform_indices = @transform_7, window_bounds = array<i64: 16, 32>}]} {
    %c0 = arith.constant 0 : index
    %c0_0 = arith.constant 0 : index
    %0 = vector.load %arg1[%c0, %c0_0] : memref<16x32xf32, #tpu.memory_space<vmem>>, vector<16x32xf32>
    %cst = arith.constant dense<0.000000e+00> : vector<16xf32>
    %1 = vector.multi_reduction <add>, %0, %cst [1] : vector<16x32xf32> to vector<16xf32>
    %2 = vector.shape_cast %1 : vector<16xf32> to vector<16x1xf32>
    %cst_1 = arith.constant 3.200000e+01 : f32
    %3 = vector.broadcast %cst_1 : f32 to vector<16x1xf32>
    %4 = arith.divf %2, %3 : vector<16x1xf32>
    %5 = vector.broadcast %4 : vector<16x1xf32> to vector<16x32xf32>
    %6 = arith.subf %0, %5 : vector<16x32xf32>
    %7 = arith.mulf %6, %6 : vector<16x32xf32>
    %cst_2 = arith.constant dense<0.000000e+00> : vector<16xf32>
    %8 = vector.multi_reduction <add>, %7, %cst_2 [1] : vector<16x32xf32> to vector<16xf32>
    %9 = vector.shape_cast %8 : vector<16xf32> to vector<16x1xf32>
    %cst_3 = arith.constant 3.200000e+01 : f32
    %10 = vector.broadcast %cst_3 : f32 to vector<16x1xf32>
    %11 = arith.divf %9, %10 : vector<16x1xf32>
    %12 = vector.broadcast %4 : vector<16x1xf32> to vector<16x32xf32>
    %13 = arith.subf %0, %12 : vector<16x32xf32>
    %cst_4 = arith.constant 9.99999974E-6 : f32
    %14 = vector.broadcast %cst_4 : f32 to vector<16x1xf32>
    %15 = arith.addf %11, %14 : vector<16x1xf32>
    %16 = math.rsqrt %15 : vector<16x1xf32>
    %17 = vector.broadcast %16 : vector<16x1xf32> to vector<16x32xf32>
    %18 = arith.mulf %13, %17 : vector<16x32xf32>
    %c0_5 = arith.constant 0 : index
    %c0_6 = arith.constant 0 : index
    %19 = vector.load %arg2[%c0_5, %c0_6] : memref<1x32xf32, #tpu.memory_space<vmem>>, vector<1x32xf32>
    %20 = vector.broadcast %19 : vector<1x32xf32> to vector<16x32xf32>
    %21 = arith.mulf %18, %20 : vector<16x32xf32>
    %c0_7 = arith.constant 0 : index
    %c0_8 = arith.constant 0 : index
    %22 = vector.load %arg3[%c0_7, %c0_8] : memref<1x32xf32, #tpu.memory_space<vmem>>, vector<1x32xf32>
    %23 = vector.broadcast %22 : vector<1x32xf32> to vector<16x32xf32>
    %24 = arith.addf %21, %23 : vector<16x32xf32>
    %c0_9 = arith.constant 0 : index
    %c0_10 = arith.constant 0 : index
    %25 = vector.load %arg4[%c0_9, %c0_10] : memref<32x96xf32, #tpu.memory_space<vmem>>, vector<32x96xf32>
    %cst_11 = arith.constant dense<0.000000e+00> : vector<16x96xf32>
    %26 = tpu.matmul %24, %25, %cst_11 {dimension_numbers = #tpu.dot_dimension_numbers<[1], [0], [0], [1], [0, 0, 1, 1], [], []>} : vector<16x32xf32>, vector<32x96xf32>, vector<16x96xf32> -> vector<16x96xf32>
    %c0_12 = arith.constant 0 : index
    %c0_13 = arith.constant 0 : index
    %27 = vector.load %arg5[%c0_12, %c0_13] : memref<1x96xf32, #tpu.memory_space<vmem>>, vector<1x96xf32>
    %28 = vector.broadcast %27 : vector<1x96xf32> to vector<16x96xf32>
    %29 = arith.addf %26, %28 : vector<16x96xf32>
    %30 = vector.extract_strided_slice %29 {offsets = [0, 0], sizes = [16, 32], strides = [1, 1]} : vector<16x96xf32> to vector<16x32xf32>
    %c0_14 = arith.constant 0 : index
    %c0_15 = arith.constant 0 : index
    %31 = vector.load %arg6[%c0_14, %c0_15] : memref<16x32xf32, #tpu.memory_space<vmem>>, vector<16x32xf32>
    tpu.vector_store %arg6[%c0_14, %c0_15], %30 {strides = array<i32>} : memref<16x32xf32, #tpu.memory_space<vmem>>, vector<16x32xf32>,
    %32 = vector.extract_strided_slice %29 {offsets = [0, 32], sizes = [16, 32], strides = [1, 1]} : vector<16x96xf32> to vector<16x32xf32>
    %c0_16 = arith.constant 0 : index
    %c0_17 = arith.constant 0 : index
    %33 = vector.load %arg7[%c0_16, %c0_17] : memref<16x32xf32, #tpu.memory_space<vmem>>, vector<16x32xf32>
    tpu.vector_store %arg7[%c0_16, %c0_17], %32 {strides = array<i32>} : memref<16x32xf32, #tpu.memory_space<vmem>>, vector<16x32xf32>,
    %34 = vector.extract_strided_slice %29 {offsets = [0, 64], sizes = [16, 32], strides = [1, 1]} : vector<16x96xf32> to vector<16x32xf32>
    %c0_18 = arith.constant 0 : index
    %c0_19 = arith.constant 0 : index
    %35 = vector.load %arg8[%c0_18, %c0_19] : memref<16x32xf32, #tpu.memory_space<vmem>>, vector<16x32xf32>
    tpu.vector_store %arg8[%c0_18, %c0_19], %34 {strides = array<i32>} : memref<16x32xf32, #tpu.memory_space<vmem>>, vector<16x32xf32>,
    return
  }
  func.func @transform_0(%arg0: i32) -> (i32, i32) {
    %c0_i32 = arith.constant 0 : i32
    %c0_i32_0 = arith.constant 0 : i32
    return %arg0, %c0_i32 : i32, i32
  }
  func.func @transform_1(%arg0: i32) -> (i32, i32) {
    %c0_i32 = arith.constant 0 : i32
    %c0_i32_0 = arith.constant 0 : i32
    %c0_i32_1 = arith.constant 0 : i32
    return %c0_i32, %c0_i32_0 : i32, i32
  }
  func.func @transform_2(%arg0: i32) -> (i32, i32) {
    %c0_i32 = arith.constant 0 : i32
    %c0_i32_0 = arith.constant 0 : i32
    %c0_i32_1 = arith.constant 0 : i32
    return %c0_i32, %c0_i32_0 : i32, i32
  }
  func.func @transform_3(%arg0: i32) -> (i32, i32) {
    %c0_i32 = arith.constant 0 : i32
    %c0_i32_0 = arith.constant 0 : i32
    %c0_i32_1 = arith.constant 0 : i32
    return %c0_i32, %c0_i32_0 : i32, i32
  }
  func.func @transform_4(%arg0: i32) -> (i32, i32) {
    %c0_i32 = arith.constant 0 : i32
    %c0_i32_0 = arith.constant 0 : i32
    %c0_i32_1 = arith.constant 0 : i32
    return %c0_i32, %c0_i32_0 : i32, i32
  }
  func.func @transform_5(%arg0: i32) -> (i32, i32) {
    %c0_i32 = arith.constant 0 : i32
    %c0_i32_0 = arith.constant 0 : i32
    return %arg0, %c0_i32 : i32, i32
  }
  func.func @transform_6(%arg0: i32) -> (i32, i32) {
    %c0_i32 = arith.constant 0 : i32
    %c0_i32_0 = arith.constant 0 : i32
    return %arg0, %c0_i32 : i32, i32
  }
  func.func @transform_7(%arg0: i32) -> (i32, i32) {
    %c0_i32 = arith.constant 0 : i32
    %c0_i32_0 = arith.constant 0 : i32
    return %arg0, %c0_i32 : i32, i32
  }
}

</mosaic_0001>

<bundles_post_ra>
// kernel: tpu_custom_call.1
= control target key start
LH: loop header
LB: loop body
LE: loop exit
PB: predicated region body
PF: predicated region fallthrough
CT: control target
= control target key end

     0   :  { %13 = vsyncpa [#allocation3], 0  ;;  %s568_s0 = inlined_call_operand.hbm [shape: f32[16,32], index: 0, kind: input, shape index: {}]   ;;  %s569_s1 = inlined_call_operand.vmem [shape: f32[1,32], index: 1, kind: input, shape index: {}]   ;;  %s570_s2 = inlined_call_operand.vmem [shape: f32[1,32], index: 2, kind: input, shape index: {}]   ;;  %s571_s3 = inlined_call_operand.hbm [shape: f32[32,96], index: 3, kind: input, shape index: {}]   ;;  %s572_s4 = inlined_call_operand.vmem [shape: f32[1,96], index: 4, kind: input, shape index: {}]   ;;  %s573_s5 = inlined_call_operand.hbm [shape: f32[16,32], index: 5, kind: output, shape index: {0}]   ;;  %s574_s6 = inlined_call_operand.hbm [shape: f32[16,32], index: 6, kind: output, shape index: {1}]   ;;  %s575_s7 = inlined_call_operand.hbm [shape: f32[16,32], index: 7, kind: output, shape index: {2}]  }
   0x1   :  { %14 = vsyncpa [#allocation6], 0 }
   0x2   :  { %15 = vsyncpa [#allocation4], 0 }
   0x3   :  { %16 = vsyncpa [#allocation9], 0  ;;  %s423_s24 = smov [#allocation2]   ;;  %s305_s28 = scalar_lea.hbm %s568_s0, 256 }
   0x4   :  { %s22_s25 = sshll.u32 %s423_s24, 4  ;;  %p306_p0 = scmp.ne.s32.totalorder %s568_s0, %s305_s28  ;;  %s23_s25 = int_to_ptr.vmem [resolvable:$true] %s22_s25 }
   0x5   :  { %p309_p1 = scmp.lt.u32.totalorder %s305_s28, %s568_s0 }
   0x7   :  { %p311_p2 = pnand %p309_p1, %p306_p0 }
   0x9   :  { %314 = shalt.err (!%p311_p2)
}
   0xa   :  { %s315_s10 = scalar_lea.vmem %s23_s25, 256  ;;  %p320_p4 = scmp.lt.s32.totalorder %s23_s25, %s23_s25 }
   0xb   :  { %p316_p3 = scmp.ne.s32.totalorder %s23_s25, %s315_s10  ;;  %p321_p5 = scmp.lt.s32.totalorder %s315_s10, %s315_s10 }
   0xd   :  { %p322_p6 = por %p321_p5, %p320_p4 }
   0xf   :  { %p323_p7 = pnand %p322_p6, %p316_p3 }
  0x11   :  { %326 = shalt.err (!%p323_p7)
}
  0x12   :  { %s424_s11 = smov 128   ;;  %s425_s12 = smov 8  }
  0x13   :  { %28 = dma.hbm_to_vmem [thread:$0]  %s568_s0, 256, %s23_s25, [#allocation3], %s424_s11, %s424_s11, %s425_s12  }
  0x14   :  { %s426_s15 = smov [#allocation5]   ;;  %s327_s19 = scalar_lea.hbm %s571_s3, 512 }
  0x15   :  { %s38_s16 = sshll.u32 %s426_s15, 4  ;;  %p328_p8 = scmp.ne.s32.totalorder %s571_s3, %s327_s19  ;;  %s39_s16 = int_to_ptr.vmem [resolvable:$true] %s38_s16 }
  0x16   :  { %p331_p9 = scmp.lt.u32.totalorder %s327_s19, %s571_s3 }
  0x18   :  { %p333_p10 = pnand %p331_p9, %p328_p8 }
  0x1a   :  { %336 = shalt.err (!%p333_p10)
}
  0x1b   :  { %s337_s24 = scalar_lea.vmem %s39_s16, 512  ;;  %p342_p12 = scmp.lt.s32.totalorder %s39_s16, %s39_s16 }
  0x1c   :  { %p338_p11 = scmp.ne.s32.totalorder %s39_s16, %s337_s24  ;;  %p343_p13 = scmp.lt.s32.totalorder %s337_s24, %s337_s24 }
  0x1e   :  { %p344_p0 = por %p343_p13, %p342_p12 }
  0x20   :  { %p345_p1 = pnand %p344_p0, %p338_p11 }
  0x22   :  { %348 = shalt.err (!%p345_p1)
}
  0x23   :  { %44 = dma.hbm_to_vmem [thread:$0]  %s571_s3, 512, %s39_s16, [#allocation6], %s424_s11, %s424_s11, %s425_s12  }
  0x24   :  { %415 = dma.done.wait [#allocation3], 256  }
  0x25   :  { %416 = vsyncadd [#allocation3], 4294967040 }
  0x26   :  { %417 = dma.done.wait [#allocation6], 512  }
  0x27   :  { %418 = vsyncadd [#allocation6], 4294966784  ;;  %vm55_vm0 = vcmask 261120   ;;  %v53_v0 = vld [vmem:[#allocation2] sm:$0xff]  ;;  %v54_v1 = vld [vmem:[#allocation2 + $0x8] sm:$0xff] }
  0x28   :  { %v56_v2 = vsel %vm55_vm0, %v53_v0, 0.0  ;;  %v59_v3 = vsel %vm55_vm0, %v54_v1, 0.0  ;;  %v101_v14 = vld [vmem:[#allocation5] sm:$0xff]  ;;  %v102_v15 = vld [vmem:[#allocation5 + $0x8] sm:$0xff]  ;;  %v103_v16 = vld [vmem:[#allocation5 + $0x10] sm:$0xff] }
  0x29   :  { %57 = vadd.xlane.f32.xlu0 %v56_v2  ;;  %v284_v17 = vpack.c.bf16 %v102_v15, %v101_v14  ;;  %v104_v18 = vld [vmem:[#allocation5 + $0x18] sm:$0xff]  ;;  %v262_v27 = vld [vmem:[%s569_s1] ss:$0 sm:$0xff]  ;;  %s427_s1 = smov [#allocation7]  }
  0x2a   :  { %v288_v19 = vpack.c.bf16 %v104_v18, %v103_v16  ;;  %v263_v29 = vld [vmem:[%s570_s2] ss:$0 sm:$0xff]  ;;  %s218_s8 = sshll.u32 %s427_s1, 4  ;;  %s428_s2 = smov 96   ;;  %s219_s8 = int_to_ptr.vmem [resolvable:$true] %s218_s8 }
  0x2b   :  { %285 = vmatprep.subr.bf16.mxu0 %v284_v17  ;;  %v264_v36 = vld [vmem:[%s572_s4] ss:$0 sm:$0xff]  ;;  %s349_s9 = scalar_lea.vmem %s219_s8, 256  ;;  %p354_p3 = scmp.lt.s32.totalorder %s219_s8, %s219_s8 }
  0x2c   :  { %287 = vmatpush3.bf16.msra.mxu0 %v284_v17  ;;  %p350_p2 = scmp.ne.s32.totalorder %s219_s8, %s349_s9  ;;  %p355_p4 = scmp.lt.s32.totalorder %s349_s9, %s349_s9 }
  0x2d   :  { %60 = vadd.xlane.f32.xlu0 %v59_v3  ;;  %289 = vmatprep.subr.bf16.mxu0 %v288_v19 }
  0x2e   :  { %p356_p5 = por %p355_p4, %p354_p3 }
  0x30   :  { %291 = vmatpush3.bf16.msra.mxu0 %v288_v19  ;;  %p357_p6 = pnand %p356_p5, %p350_p2 }
  0xb6   :  { %v58_v4 = vpop.xlane.xlu0 %57 }
  0xb7   :  { %v63_v5 = vmul.f32 0.03125, %v58_v4 }
  0xb9   :  { %v65_v6 = vsub.f32 %v53_v0, %v63_v5 }
  0xba   :  { %v61_v7 = vpop.xlane.xlu0 %60 }
  0xbb   :  { %v64_v8 = vmul.f32 0.03125, %v61_v7  ;;  %v67_v9 = vmul.f32 %v65_v6, %v65_v6 }
  0xbd   :  { %v66_v10 = vsub.f32 %v54_v1, %v64_v8  ;;  %v69_v11 = vsel %vm55_vm0, %v67_v9, 0.0 }
  0xbe   :  { %70 = vadd.xlane.f32.xlu1 %v69_v11 }
  0xbf   :  { %v68_v12 = vmul.f32 %v66_v10, %v66_v10 }
  0xc1   :  { %v72_v13 = vsel %vm55_vm0, %v68_v12, 0.0 }
  0xc2   :  { %73 = vadd.xlane.f32.xlu1 %v72_v13 }
 0x14b   :  { %v71_v20 = vpop.xlane.xlu1 %70 }
 0x14c   :  { %v75_v21 = vmul.f32 0.03125, %v71_v20 }
 0x14e   :  { %v77_v22 = vadd.f32 1e-05, %v75_v21 }
 0x14f   :  { %v74_v23 = vpop.xlane.xlu1 %73 }
 0x150   :  { %301 = vrsqrt.f32 %v77_v22  ;;  %v76_v24 = vmul.f32 0.03125, %v74_v23 }
 0x152   :  { %v78_v25 = vadd.f32 1e-05, %v76_v24 }
 0x154   :  { %303 = vrsqrt.f32 %v78_v25 }
 0x15a   :  { %v302_v26 = vpop.eup %301 }
 0x15b   :  { %v81_v28 = vmul.f32 %v302_v26, %v65_v6 }
 0x15d   :  { %v90_v30 = vmul.f32 %v262_v27, %v81_v28 }
 0x15e   :  { %v304_v31 = vpop.eup %303 }
 0x15f   :  { %v82_v32 = vmul.f32 %v304_v31, %v66_v10  ;;  %v99_v33 = vadd.f32 %v263_v29, %v90_v30 }
 0x161   :  { %v91_v34 = vmul.f32 %v262_v27, %v82_v32  ;;  %281 = vmatprep.mubr.msk.f32.mxu0 %vm55_vm0, %v99_v33 }
 0x163   :  { %v100_v35 = vadd.f32 %v263_v29, %v91_v34 }
 0x165   :  { %282 = vmatmul.mubr.msk.f32.vlgmr.msra.gmra.mrb[0].mxu0 %vm55_vm0, %v100_v35 }
 0x238   :  { %v283_v37 = vpop.f32.mrb[0].mxu0 }
 0x239   :  { %v190_v38 = vadd.f32 %v283_v37, %v264_v36  ;;  %v184_v39 = vpop.f32.mrb[1].mxu0 }
 0x23a   :  { %v185_v40 = vadd.f32 %v264_v36, %v184_v39 }
 0x23b   :  { %194 = vst.msk [vmem:[#allocation7 + $0x8] sm:$0xff] %vm55_vm0, %v190_v38  ;;  %199 = vrot.lane.b32.xlu1 %v190_v38, %s428_s2 }
 0x23c   :  { %193 = vst.msk [vmem:[#allocation7] sm:$0xff] %vm55_vm0, %v185_v40  ;;  %197 = vrot.lane.b32.xlu0 %v185_v40, %s428_s2 }
 0x23d   :  { %360 = shalt.err (!%p357_p6)
}
 0x23e   :  { %s361_s13 = scalar_lea.hbm %s573_s5, 256 }
 0x23f   :  { %p362_p7 = scmp.ne.s32.totalorder %s573_s5, %s361_s13  ;;  %p365_p8 = scmp.lt.u32.totalorder %s361_s13, %s573_s5 }
 0x241   :  { %p367_p9 = pnand %p365_p8, %p362_p7 }
 0x243   :  { %370 = shalt.err (!%p367_p9)
}
 0x244   :  { %224 = dma.vmem_to_hbm [thread:$0]  %s219_s8, 256, %s573_s5, [#allocation4], %s424_s11, %s424_s11, %s425_s12  }
 0x245   :  { %s429_s20 = smov 64   ;;  %s430_s21 = smov [#allocation8]  }
 0x246   :  { %205 = vrot.lane.b32.xlu1 %v185_v40, %s429_s20  ;;  %s230_s22 = sshll.u32 %s430_s21, 4  ;;  %s231_s22 = int_to_ptr.vmem [resolvable:$true] %s230_s22 }
 0x247   :  { %s371_s23 = scalar_lea.vmem %s231_s22, 256  ;;  %p376_p11 = scmp.lt.s32.totalorder %s231_s22, %s231_s22 }
 0x248   :  { %p372_p10 = scmp.ne.s32.totalorder %s231_s22, %s371_s23  ;;  %p377_p12 = scmp.lt.s32.totalorder %s371_s23, %s371_s23 }
 0x24a   :  { %207 = vrot.lane.b32.xlu1 %v190_v38, %s429_s20  ;;  %p378_p13 = por %p377_p12, %p376_p11 }
 0x24c   :  { %p379_p0 = pnand %p378_p13, %p372_p10 }
 0x2ad   :  { %v200_v41 = vpop.permute.xlu1 %199 }
 0x2ae   :  { %204 = vst.msk [vmem:[#allocation8 + $0x8] sm:$0xff] %vm55_vm0, %v200_v41  ;;  %v198_v42 = vpop.permute.xlu0 %197 }
 0x2af   :  { %203 = vst.msk [vmem:[#allocation8] sm:$0xff] %vm55_vm0, %v198_v42 }
 0x2b0   :  { %382 = shalt.err (!%p379_p0)
}
 0x2b1   :  { %s383_s0 = scalar_lea.hbm %s574_s6, 256 }
 0x2b2   :  { %p384_p1 = scmp.ne.s32.totalorder %s574_s6, %s383_s0  ;;  %p387_p2 = scmp.lt.u32.totalorder %s383_s0, %s574_s6 }
 0x2b4   :  { %p389_p3 = pnand %p387_p2, %p384_p1 }
 0x2b6   :  { %392 = shalt.err (!%p389_p3)
}
 0x2b7   :  { %236 = dma.vmem_to_hbm [thread:$0]  %s231_s22, 256, %s574_s6, [#allocation9], %s424_s11, %s424_s11, %s425_s12  }
 0x2b8   :  { %v206_v43 = vpop.permute.xlu1 %205  ;;  %s431_s30 = smov [#allocation10]  }
 0x2b9   :  { %s242_s1 = sshll.u32 %s431_s30, 4  ;;  %211 = vst.msk [vmem:[#allocation10] sm:$0xff] %vm55_vm0, %v206_v43  ;;  %s243_s1 = int_to_ptr.vmem [resolvable:$true] %s242_s1 }
 0x2ba   :  { %s393_s8 = scalar_lea.vmem %s243_s1, 256  ;;  %p398_p5 = scmp.lt.s32.totalorder %s243_s1, %s243_s1 }
 0x2bb   :  { %p394_p4 = scmp.ne.s32.totalorder %s243_s1, %s393_s8  ;;  %p399_p6 = scmp.lt.s32.totalorder %s393_s8, %s393_s8 }
 0x2bc   :  { %v208_v44 = vpop.permute.xlu1 %207 }
 0x2bd   :  { %212 = vst.msk [vmem:[#allocation10 + $0x8] sm:$0xff] %vm55_vm0, %v208_v44  ;;  %p400_p7 = por %p399_p6, %p398_p5 }
 0x2bf   :  { %p401_p8 = pnand %p400_p7, %p394_p4 }
 0x2c1   :  { %404 = shalt.err (!%p401_p8)
}
 0x2c2   :  { %s405_s6 = scalar_lea.hbm %s575_s7, 256 }
 0x2c3   :  { %p406_p9 = scmp.ne.s32.totalorder %s575_s7, %s405_s6  ;;  %p409_p10 = scmp.lt.u32.totalorder %s405_s6, %s575_s7 }
 0x2c5   :  { %p411_p11 = pnand %p409_p10, %p406_p9 }
 0x2c7   :  { %414 = shalt.err (!%p411_p11)
}
 0x2c8   :  { %248 = dma.vmem_to_hbm [thread:$0]  %s243_s1, 256, %s575_s7, [#allocation9], %s424_s11, %s424_s11, %s425_s12  }
 0x2c9   :  { %419 = dma.done.wait [#allocation4], 256  }
 0x2ca   :  { %420 = vsyncadd [#allocation4], 4294967040 }
 0x2cb   :  { %421 = dma.done.wait [#allocation9], 512  }
 0x2cc   :  { %422 = vsyncadd [#allocation9], 4294966784 }
 0x2cd   :  { %258 = vsyncpa [#allocation3], 1 }
 0x2ce   :  { %259 = vsyncpa [#allocation6], 1 }
 0x2cf   :  { %260 = vsyncpa [#allocation4], 1 }
 0x2d0   :  { %261 = vsyncpa [#allocation9], 1 }

</bundles_post_ra>
